<compile_context>
chip_gen: v5e
topology: v5e:2x2
jax: 0.10.0
libtpu: 0.0.40
codegen_flags: <defaults>
</compile_context>

<pallas_src>
import math

import jax
import jax.numpy as jnp
from jax.experimental import pallas as pl
from jax.experimental.pallas import tpu as pltpu

HIDDEN = 32                   # hidden_size
N_HEADS = 4                   # multi_head
D_HEAD = HIDDEN // N_HEADS    # hidden_size_head
DROPOUT_RATE = 0.1            # unused (eval mode)


# ----------------------------- Pallas kernel --------------------------------

def _mhatt_kernel(xq_ref, xk_ref, xv_ref, mask_ref,
                  wq_ref, wk_ref, wv_ref,
                  bq_ref, bk_ref, bv_ref,
                  wm_ref, bm_ref, o_ref):
    """Fully fused MHAtt forward for one batch element (one grid step).

    xq/xk/xv : (S, H)   q/k/v inputs for this batch element
    mask     : (1, S)   f32 0/1, 1.0 = masked (True in the torch module)
    wq/wk/wv : (H, H)   projection weights, pre-transposed (x @ w == x @ W.T)
    bq/bk/bv : (1, H)
    wm       : (H, H)   linear_merge weight, pre-transposed
    bm       : (1, H)
    o        : (S, H)
    """
    S, H = xq_ref.shape
    nH, D = N_HEADS, D_HEAD
    scale = 1.0 / math.sqrt(D)

    # Lane-dense projections: full-H contraction, full-H output lanes, one MXU dot each.
    q = jnp.dot(xq_ref[...], wq_ref[...], preferred_element_type=jnp.float32) + bq_ref[...]
    k = jnp.dot(xk_ref[...], wk_ref[...], preferred_element_type=jnp.float32) + bk_ref[...]
    v = jnp.dot(xv_ref[...], wv_ref[...], preferred_element_type=jnp.float32) + bv_ref[...]

    # Hoisted mask: ONE broadcast + ONE compare shared by all heads.
    mask_b = jnp.broadcast_to(mask_ref[...], (S, S)) != 0.0          # True = masked

    nt_dims = (((1,), (1,)), ((), ()))   # contract last dims of both: Q @ K^T, no transpose op
    out = jnp.zeros((S, H), jnp.float32)
    for h in range(nH):                                               # static unroll, nH = 4
        lo = h * D
        qh = q[:, lo:lo + D]                                          # (S, D) static lane slices
        kh = k[:, lo:lo + D]
        vh = v[:, lo:lo + D]

        # scores = (q_h @ k_h^T) / sqrt(d_k); masked_fill(mask, -1e9) like the reference
        sc = jax.lax.dot_general(qh, kh, nt_dims,
                                 preferred_element_type=jnp.float32) * scale
        sc = jnp.where(mask_b, jnp.float32(-1e9), sc)

        # numerically-stable softmax over keys (denominator reciprocal on the EUP)
        sc_max = jnp.max(sc, axis=-1, keepdims=True)
        p = jnp.exp(sc - sc_max)
        p = p * pl.reciprocal(jnp.sum(p, axis=-1, keepdims=True), approx=True)
        # dropout == identity (eval mode)

        att_h = jnp.dot(p, vh, preferred_element_type=jnp.float32)   # (S, D)

        # linear_merge distributed over heads: exactly concat_h(att_h) @ Wm^T,
        # without ever materializing the concatenated per-head layout.
        out = out + jnp.dot(att_h, wm_ref[lo:lo + D, :],
                            preferred_element_type=jnp.float32)

    o_ref[...] = out + bm_ref[...]


# ----------------------------- wrapper ---------------------------------------

def prepare_mhatt_params(params):
    """One-time parameter prep (hoisted out of the per-forward-call path)."""
    H = HIDDEN
    return {
        "wq_t": params["wq"].T, "wk_t": params["wk"].T, "wv_t": params["wv"].T,
        "wm_t": params["wm"].T,
        "bq": params["bq"].reshape(1, H), "bk": params["bk"].reshape(1, H),
        "bv": params["bv"].reshape(1, H), "bm": params["bm"].reshape(1, H),
    }


def mhatt_forward(v, k, q, mask, prep):
    """v, k, q: (B, S, HIDDEN); mask: (B, 1, 1, S) bool (True = masked)."""
    B, S, H = q.shape

    # Only a cheap cast/reshape here — the masked_fill select happens in-kernel.
    mask_f = mask.reshape(B, 1, S).astype(jnp.float32)

    batch3 = lambda b: (b, 0, 0)
    whole2 = lambda b: (0, 0)
    return pl.pallas_call(
        _mhatt_kernel,
        out_shape=jax.ShapeDtypeStruct((B, S, H), jnp.float32),
        grid=(B,),   # one batch element per step; "parallel" => megacore sharding on v7x
        in_specs=[
            pl.BlockSpec((None, S, H), batch3),   # q
            pl.BlockSpec((None, S, H), batch3),   # k
            pl.BlockSpec((None, S, H), batch3),   # v
            pl.BlockSpec((None, 1, S), batch3),   # mask (0/1 f32)
            pl.BlockSpec((H, H), whole2),         # Wq^T
            pl.BlockSpec((H, H), whole2),         # Wk^T
            pl.BlockSpec((H, H), whole2),         # Wv^T
            pl.BlockSpec((1, H), whole2),         # bq
            pl.BlockSpec((1, H), whole2),         # bk
            pl.BlockSpec((1, H), whole2),         # bv
            pl.BlockSpec((H, H), whole2),         # Wm^T
            pl.BlockSpec((1, H), whole2),         # bm
        ],
        out_specs=pl.BlockSpec((None, S, H), batch3),
        compiler_params=pltpu.CompilerParams(dimension_semantics=("parallel",)),
    )(q, k, v, mask_f,
      prep["wq_t"], prep["wk_t"], prep["wv_t"],
      prep["bq"], prep["bk"], prep["bv"],
      prep["wm_t"], prep["bm"])


# ----------------------------- reference (plain JAX) -------------------------

def ref_forward(v, k, q, mask, params):
    B, S, H = q.shape

    def lin(x, w, b):
        return x @ w.T + b

    def project(x, w, b):
        return jnp.transpose(
            lin(x, w, b).reshape(B, S, N_HEADS, D_HEAD), (0, 2, 1, 3))

    vp, kp, qp = (
        project(v, params["wv"], params["bv"]),
        project(k, params["wk"], params["bk"]),
        project(q, params["wq"], params["bq"]),
    )
    scores = jnp.einsum("bhqd,bhkd->bhqk", qp, kp) / math.sqrt(D_HEAD)
    scores = jnp.where(mask, -1e9, scores)
    p = jax.nn.softmax(scores, axis=-1)
    att = jnp.einsum("bhqk,bhkd->bhqd", p, vp)
    att = jnp.transpose(att, (0, 2, 1, 3)).reshape(B, S, H)
    return lin(att, params["wm"], params["bm"])


# ----------------------------- main -------------------------------------------

def _init_linear(key, fan_in, fan_out):
    kw, kb = jax.random.split(key)
    bound = 1.0 / math.sqrt(fan_in)
    w = jax.random.uniform(kw, (fan_out, fan_in), jnp.float32, -bound, bound)
    b = jax.random.uniform(kb, (fan_out,), jnp.float32, -bound, bound)
    return w, b


if __name__ == "__main__":
    key = jax.random.PRNGKey(0)
    B, S = 2, 8
    keys = jax.random.split(key, 8)

    q_in = jax.random.normal(keys[0], (B, S, HIDDEN), jnp.float32)
    k_in = jax.random.normal(keys[1], (B, S, HIDDEN), jnp.float32)
    v_in = jax.random.normal(keys[2], (B, S, HIDDEN), jnp.float32)
    mask = jax.random.uniform(keys[3], (B, 1, 1, S)) < 0.25   # True => masked

    params = {}
    for name, kk in zip(("v", "k", "q", "m"), keys[4:8]):
        w, b = _init_linear(kk, HIDDEN, HIDDEN)
        params[f"w{name}"] = w
        params[f"b{name}"] = b

    prep = prepare_mhatt_params(params)   # one-time weight prep, NOT per forward call

    out = mhatt_forward(v_in, k_in, q_in, mask, prep)
    out = jax.block_until_ready(out)

    ref = ref_forward(v_in, k_in, q_in, mask, params)
    assert out.shape == (B, S, HIDDEN)
    # 1e-3 tolerance accommodates the EUP approximate reciprocal in the softmax
    # denominator; everything else is exact f32.
    assert jnp.allclose(out, ref, rtol=1e-3, atol=1e-3), "mismatch vs reference"

    print("KERNEL_OK")
</pallas_src>

<mosaic_0001>
module attributes {stable_mosaic.version = 11 : i64} {
  func.func @_mhatt_kernel(%arg0: i32, %arg1: memref<1x8x32xf32, #tpu.memory_space<vmem>>, %arg2: memref<1x8x32xf32, #tpu.memory_space<vmem>>, %arg3: memref<1x8x32xf32, #tpu.memory_space<vmem>>, %arg4: memref<1x1x8xf32, #tpu.memory_space<vmem>>, %arg5: memref<32x32xf32, #tpu.memory_space<vmem>>, %arg6: memref<32x32xf32, #tpu.memory_space<vmem>>, %arg7: memref<32x32xf32, #tpu.memory_space<vmem>>, %arg8: memref<1x32xf32, #tpu.memory_space<vmem>>, %arg9: memref<1x32xf32, #tpu.memory_space<vmem>>, %arg10: memref<1x32xf32, #tpu.memory_space<vmem>>, %arg11: memref<32x32xf32, #tpu.memory_space<vmem>>, %arg12: memref<1x32xf32, #tpu.memory_space<vmem>>, %arg13: memref<1x8x32xf32, #tpu.memory_space<vmem>>) attributes {dimension_semantics = [#tpu.dimension_semantics<parallel>], iteration_bounds = array<i64: 2>, scalar_prefetch = 0 : i64, scratch_operands = 0 : i64, tpu.core_type = #tpu.core_type<tc>, window_params = [{transform_indices = @transform_0, window_bounds = array<i64: 1, 8, 32>}, {transform_indices = @transform_1, window_bounds = array<i64: 1, 8, 32>}, {transform_indices = @transform_2, window_bounds = array<i64: 1, 8, 32>}, {transform_indices = @transform_3, window_bounds = array<i64: 1, 1, 8>}, {pipeline_mode = #tpu.pipeline_mode<synchronous>, transform_indices = @transform_4, window_bounds = array<i64: 32, 32>}, {pipeline_mode = #tpu.pipeline_mode<synchronous>, transform_indices = @transform_5, window_bounds = array<i64: 32, 32>}, {pipeline_mode = #tpu.pipeline_mode<synchronous>, transform_indices = @transform_6, window_bounds = array<i64: 32, 32>}, {pipeline_mode = #tpu.pipeline_mode<synchronous>, transform_indices = @transform_7, window_bounds = array<i64: 1, 32>}, {pipeline_mode = #tpu.pipeline_mode<synchronous>, transform_indices = @transform_8, window_bounds = array<i64: 1, 32>}, {pipeline_mode = #tpu.pipeline_mode<synchronous>, transform_indices = @transform_9, window_bounds = array<i64: 1, 32>}, {pipeline_mode = #tpu.pipeline_mode<synchronous>, transform_indices = @transform_10, window_bounds = array<i64: 32, 32>}, {pipeline_mode = #tpu.pipeline_mode<synchronous>, transform_indices = @transform_11, window_bounds = array<i64: 1, 32>}, {transform_indices = @transform_12, window_bounds = array<i64: 1, 8, 32>}]} {
    %c0 = arith.constant 0 : index
    %c0_0 = arith.constant 0 : index
    %c0_1 = arith.constant 0 : index
    %0 = vector.load %arg1[%c0, %c0_0, %c0_1] : memref<1x8x32xf32, #tpu.memory_space<vmem>>, vector<1x8x32xf32>
    %1 = vector.shape_cast %0 : vector<1x8x32xf32> to vector<8x32xf32>
    %c0_2 = arith.constant 0 : index
    %c0_3 = arith.constant 0 : index
    %2 = vector.load %arg5[%c0_2, %c0_3] : memref<32x32xf32, #tpu.memory_space<vmem>>, vector<32x32xf32>
    %cst = arith.constant dense<0.000000e+00> : vector<8x32xf32>
    %3 = tpu.matmul %1, %2, %cst {dimension_numbers = #tpu.dot_dimension_numbers<[1], [0], [0], [1], [0, 0, 1, 1], [], []>} : vector<8x32xf32>, vector<32x32xf32>, vector<8x32xf32> -> vector<8x32xf32>
    %c0_4 = arith.constant 0 : index
    %c0_5 = arith.constant 0 : index
    %4 = vector.load %arg8[%c0_4, %c0_5] : memref<1x32xf32, #tpu.memory_space<vmem>>, vector<1x32xf32>
    %5 = vector.broadcast %4 : vector<1x32xf32> to vector<8x32xf32>
    %6 = arith.addf %3, %5 : vector<8x32xf32>
    %c0_6 = arith.constant 0 : index
    %c0_7 = arith.constant 0 : index
    %c0_8 = arith.constant 0 : index
    %7 = vector.load %arg2[%c0_6, %c0_7, %c0_8] : memref<1x8x32xf32, #tpu.memory_space<vmem>>, vector<1x8x32xf32>
    %8 = vector.shape_cast %7 : vector<1x8x32xf32> to vector<8x32xf32>
    %c0_9 = arith.constant 0 : index
    %c0_10 = arith.constant 0 : index
    %9 = vector.load %arg6[%c0_9, %c0_10] : memref<32x32xf32, #tpu.memory_space<vmem>>, vector<32x32xf32>
    %cst_11 = arith.constant dense<0.000000e+00> : vector<8x32xf32>
    %10 = tpu.matmul %8, %9, %cst_11 {dimension_numbers = #tpu.dot_dimension_numbers<[1], [0], [0], [1], [0, 0, 1, 1], [], []>} : vector<8x32xf32>, vector<32x32xf32>, vector<8x32xf32> -> vector<8x32xf32>
    %c0_12 = arith.constant 0 : index
    %c0_13 = arith.constant 0 : index
    %11 = vector.load %arg9[%c0_12, %c0_13] : memref<1x32xf32, #tpu.memory_space<vmem>>, vector<1x32xf32>
    %12 = vector.broadcast %11 : vector<1x32xf32> to vector<8x32xf32>
    %13 = arith.addf %10, %12 : vector<8x32xf32>
    %c0_14 = arith.constant 0 : index
    %c0_15 = arith.constant 0 : index
    %c0_16 = arith.constant 0 : index
    %14 = vector.load %arg3[%c0_14, %c0_15, %c0_16] : memref<1x8x32xf32, #tpu.memory_space<vmem>>, vector<1x8x32xf32>
    %15 = vector.shape_cast %14 : vector<1x8x32xf32> to vector<8x32xf32>
    %c0_17 = arith.constant 0 : index
    %c0_18 = arith.constant 0 : index
    %16 = vector.load %arg7[%c0_17, %c0_18] : memref<32x32xf32, #tpu.memory_space<vmem>>, vector<32x32xf32>
    %cst_19 = arith.constant dense<0.000000e+00> : vector<8x32xf32>
    %17 = tpu.matmul %15, %16, %cst_19 {dimension_numbers = #tpu.dot_dimension_numbers<[1], [0], [0], [1], [0, 0, 1, 1], [], []>} : vector<8x32xf32>, vector<32x32xf32>, vector<8x32xf32> -> vector<8x32xf32>
    %c0_20 = arith.constant 0 : index
    %c0_21 = arith.constant 0 : index
    %18 = vector.load %arg10[%c0_20, %c0_21] : memref<1x32xf32, #tpu.memory_space<vmem>>, vector<1x32xf32>
    %19 = vector.broadcast %18 : vector<1x32xf32> to vector<8x32xf32>
    %20 = arith.addf %17, %19 : vector<8x32xf32>
    %c0_22 = arith.constant 0 : index
    %c0_23 = arith.constant 0 : index
    %c0_24 = arith.constant 0 : index
    %21 = vector.load %arg4[%c0_22, %c0_23, %c0_24] : memref<1x1x8xf32, #tpu.memory_space<vmem>>, vector<1x1x8xf32>
    %22 = vector.shape_cast %21 : vector<1x1x8xf32> to vector<1x8xf32>
    %23 = vector.shape_cast %22 : vector<1x8xf32> to vector<1x8xf32>
    %24 = vector.broadcast %23 : vector<1x8xf32> to vector<8x8xf32>
    %cst_25 = arith.constant 0.000000e+00 : f32
    %25 = vector.broadcast %cst_25 : f32 to vector<8x8xf32>
    %26 = arith.cmpf one, %24, %25 : vector<8x8xf32>
    %cst_26 = arith.constant 0.000000e+00 : f32
    %27 = vector.broadcast %cst_26 : f32 to vector<8x32xf32>
    %28 = vector.extract_strided_slice %6 {offsets = [0, 0], sizes = [8, 8], strides = [1, 1]} : vector<8x32xf32> to vector<8x8xf32>
    %29 = vector.extract_strided_slice %13 {offsets = [0, 0], sizes = [8, 8], strides = [1, 1]} : vector<8x32xf32> to vector<8x8xf32>
    %30 = vector.extract_strided_slice %20 {offsets = [0, 0], sizes = [8, 8], strides = [1, 1]} : vector<8x32xf32> to vector<8x8xf32>
    %cst_27 = arith.constant dense<0.000000e+00> : vector<8x8xf32>
    %31 = tpu.matmul %28, %29, %cst_27 {dimension_numbers = #tpu.dot_dimension_numbers<[1], [1], [0], [0], [0, 0, 1, 0], [], []>} : vector<8x8xf32>, vector<8x8xf32>, vector<8x8xf32> -> vector<8x8xf32>
    %cst_28 = arith.constant 0.353553385 : f32
    %32 = vector.broadcast %cst_28 : f32 to vector<8x8xf32>
    %33 = arith.mulf %31, %32 : vector<8x8xf32>
    %cst_29 = arith.constant -1.000000e+09 : f32
    %34 = vector.broadcast %cst_29 : f32 to vector<8x8xf32>
    %35 = arith.select %26, %34, %33 : vector<8x8xi1>, vector<8x8xf32>
    %cst_30 = arith.constant dense<0xFF800000> : vector<8xf32>
    %36 = vector.multi_reduction <maximumf>, %35, %cst_30 [1] : vector<8x8xf32> to vector<8xf32>
    %37 = vector.shape_cast %36 : vector<8xf32> to vector<8x1xf32>
    %38 = vector.broadcast %37 : vector<8x1xf32> to vector<8x8xf32>
    %39 = arith.subf %35, %38 : vector<8x8xf32>
    %40 = math.exp %39 : vector<8x8xf32>
    %cst_31 = arith.constant dense<0.000000e+00> : vector<8xf32>
    %41 = vector.multi_reduction <add>, %40, %cst_31 [1] : vector<8x8xf32> to vector<8xf32>
    %42 = vector.shape_cast %41 : vector<8xf32> to vector<8x1xf32>
    %43 = tpu.reciprocal %42 {approx = true} : vector<8x1xf32> -> vector<8x1xf32>
    %44 = vector.broadcast %43 : vector<8x1xf32> to vector<8x8xf32>
    %45 = arith.mulf %40, %44 : vector<8x8xf32>
    %cst_32 = arith.constant dense<0.000000e+00> : vector<8x8xf32>
    %46 = tpu.matmul %45, %30, %cst_32 {dimension_numbers = #tpu.dot_dimension_numbers<[1], [0], [0], [1], [0, 0, 1, 1], [], []>} : vector<8x8xf32>, vector<8x8xf32>, vector<8x8xf32> -> vector<8x8xf32>
    %c0_33 = arith.constant 0 : index
    %c0_34 = arith.constant 0 : index
    %47 = vector.load %arg11[%c0_33, %c0_34] : memref<32x32xf32, #tpu.memory_space<vmem>>, vector<8x32xf32>
    %cst_35 = arith.constant dense<0.000000e+00> : vector<8x32xf32>
    %48 = tpu.matmul %46, %47, %cst_35 {dimension_numbers = #tpu.dot_dimension_numbers<[1], [0], [0], [1], [0, 0, 1, 1], [], []>} : vector<8x8xf32>, vector<8x32xf32>, vector<8x32xf32> -> vector<8x32xf32>
    %49 = arith.addf %27, %48 : vector<8x32xf32>
    %50 = vector.extract_strided_slice %6 {offsets = [0, 8], sizes = [8, 8], strides = [1, 1]} : vector<8x32xf32> to vector<8x8xf32>
    %51 = vector.extract_strided_slice %13 {offsets = [0, 8], sizes = [8, 8], strides = [1, 1]} : vector<8x32xf32> to vector<8x8xf32>
    %52 = vector.extract_strided_slice %20 {offsets = [0, 8], sizes = [8, 8], strides = [1, 1]} : vector<8x32xf32> to vector<8x8xf32>
    %cst_36 = arith.constant dense<0.000000e+00> : vector<8x8xf32>
    %53 = tpu.matmul %50, %51, %cst_36 {dimension_numbers = #tpu.dot_dimension_numbers<[1], [1], [0], [0], [0, 0, 1, 0], [], []>} : vector<8x8xf32>, vector<8x8xf32>, vector<8x8xf32> -> vector<8x8xf32>
    %cst_37 = arith.constant 0.353553385 : f32
    %54 = vector.broadcast %cst_37 : f32 to vector<8x8xf32>
    %55 = arith.mulf %53, %54 : vector<8x8xf32>
    %cst_38 = arith.constant -1.000000e+09 : f32
    %56 = vector.broadcast %cst_38 : f32 to vector<8x8xf32>
    %57 = arith.select %26, %56, %55 : vector<8x8xi1>, vector<8x8xf32>
    %cst_39 = arith.constant dense<0xFF800000> : vector<8xf32>
    %58 = vector.multi_reduction <maximumf>, %57, %cst_39 [1] : vector<8x8xf32> to vector<8xf32>
    %59 = vector.shape_cast %58 : vector<8xf32> to vector<8x1xf32>
    %60 = vector.broadcast %59 : vector<8x1xf32> to vector<8x8xf32>
    %61 = arith.subf %57, %60 : vector<8x8xf32>
    %62 = math.exp %61 : vector<8x8xf32>
    %cst_40 = arith.constant dense<0.000000e+00> : vector<8xf32>
    %63 = vector.multi_reduction <add>, %62, %cst_40 [1] : vector<8x8xf32> to vector<8xf32>
    %64 = vector.shape_cast %63 : vector<8xf32> to vector<8x1xf32>
    %65 = tpu.reciprocal %64 {approx = true} : vector<8x1xf32> -> vector<8x1xf32>
    %66 = vector.broadcast %65 : vector<8x1xf32> to vector<8x8xf32>
    %67 = arith.mulf %62, %66 : vector<8x8xf32>
    %cst_41 = arith.constant dense<0.000000e+00> : vector<8x8xf32>
    %68 = tpu.matmul %67, %52, %cst_41 {dimension_numbers = #tpu.dot_dimension_numbers<[1], [0], [0], [1], [0, 0, 1, 1], [], []>} : vector<8x8xf32>, vector<8x8xf32>, vector<8x8xf32> -> vector<8x8xf32>
    %c8 = arith.constant 8 : index
    %c0_42 = arith.constant 0 : index
    %69 = vector.load %arg11[%c8, %c0_42] : memref<32x32xf32, #tpu.memory_space<vmem>>, vector<8x32xf32>
    %cst_43 = arith.constant dense<0.000000e+00> : vector<8x32xf32>
    %70 = tpu.matmul %68, %69, %cst_43 {dimension_numbers = #tpu.dot_dimension_numbers<[1], [0], [0], [1], [0, 0, 1, 1], [], []>} : vector<8x8xf32>, vector<8x32xf32>, vector<8x32xf32> -> vector<8x32xf32>
    %71 = arith.addf %49, %70 : vector<8x32xf32>
    %72 = vector.extract_strided_slice %6 {offsets = [0, 16], sizes = [8, 8], strides = [1, 1]} : vector<8x32xf32> to vector<8x8xf32>
    %73 = vector.extract_strided_slice %13 {offsets = [0, 16], sizes = [8, 8], strides = [1, 1]} : vector<8x32xf32> to vector<8x8xf32>
    %74 = vector.extract_strided_slice %20 {offsets = [0, 16], sizes = [8, 8], strides = [1, 1]} : vector<8x32xf32> to vector<8x8xf32>
    %cst_44 = arith.constant dense<0.000000e+00> : vector<8x8xf32>
    %75 = tpu.matmul %72, %73, %cst_44 {dimension_numbers = #tpu.dot_dimension_numbers<[1], [1], [0], [0], [0, 0, 1, 0], [], []>} : vector<8x8xf32>, vector<8x8xf32>, vector<8x8xf32> -> vector<8x8xf32>
    %cst_45 = arith.constant 0.353553385 : f32
    %76 = vector.broadcast %cst_45 : f32 to vector<8x8xf32>
    %77 = arith.mulf %75, %76 : vector<8x8xf32>
    %cst_46 = arith.constant -1.000000e+09 : f32
    %78 = vector.broadcast %cst_46 : f32 to vector<8x8xf32>
    %79 = arith.select %26, %78, %77 : vector<8x8xi1>, vector<8x8xf32>
    %cst_47 = arith.constant dense<0xFF800000> : vector<8xf32>
    %80 = vector.multi_reduction <maximumf>, %79, %cst_47 [1] : vector<8x8xf32> to vector<8xf32>
    %81 = vector.shape_cast %80 : vector<8xf32> to vector<8x1xf32>
    %82 = vector.broadcast %81 : vector<8x1xf32> to vector<8x8xf32>
    %83 = arith.subf %79, %82 : vector<8x8xf32>
    %84 = math.exp %83 : vector<8x8xf32>
    %cst_48 = arith.constant dense<0.000000e+00> : vector<8xf32>
    %85 = vector.multi_reduction <add>, %84, %cst_48 [1] : vector<8x8xf32> to vector<8xf32>
    %86 = vector.shape_cast %85 : vector<8xf32> to vector<8x1xf32>
    %87 = tpu.reciprocal %86 {approx = true} : vector<8x1xf32> -> vector<8x1xf32>
    %88 = vector.broadcast %87 : vector<8x1xf32> to vector<8x8xf32>
    %89 = arith.mulf %84, %88 : vector<8x8xf32>
    %cst_49 = arith.constant dense<0.000000e+00> : vector<8x8xf32>
    %90 = tpu.matmul %89, %74, %cst_49 {dimension_numbers = #tpu.dot_dimension_numbers<[1], [0], [0], [1], [0, 0, 1, 1], [], []>} : vector<8x8xf32>, vector<8x8xf32>, vector<8x8xf32> -> vector<8x8xf32>
    %c16 = arith.constant 16 : index
    %c0_50 = arith.constant 0 : index
    %91 = vector.load %arg11[%c16, %c0_50] : memref<32x32xf32, #tpu.memory_space<vmem>>, vector<8x32xf32>
    %cst_51 = arith.constant dense<0.000000e+00> : vector<8x32xf32>
    %92 = tpu.matmul %90, %91, %cst_51 {dimension_numbers = #tpu.dot_dimension_numbers<[1], [0], [0], [1], [0, 0, 1, 1], [], []>} : vector<8x8xf32>, vector<8x32xf32>, vector<8x32xf32> -> vector<8x32xf32>
    %93 = arith.addf %71, %92 : vector<8x32xf32>
    %94 = vector.extract_strided_slice %6 {offsets = [0, 24], sizes = [8, 8], strides = [1, 1]} : vector<8x32xf32> to vector<8x8xf32>
    %95 = vector.extract_strided_slice %13 {offsets = [0, 24], sizes = [8, 8], strides = [1, 1]} : vector<8x32xf32> to vector<8x8xf32>
    %96 = vector.extract_strided_slice %20 {offsets = [0, 24], sizes = [8, 8], strides = [1, 1]} : vector<8x32xf32> to vector<8x8xf32>
    %cst_52 = arith.constant dense<0.000000e+00> : vector<8x8xf32>
    %97 = tpu.matmul %94, %95, %cst_52 {dimension_numbers = #tpu.dot_dimension_numbers<[1], [1], [0], [0], [0, 0, 1, 0], [], []>} : vector<8x8xf32>, vector<8x8xf32>, vector<8x8xf32> -> vector<8x8xf32>
    %cst_53 = arith.constant 0.353553385 : f32
    %98 = vector.broadcast %cst_53 : f32 to vector<8x8xf32>
    %99 = arith.mulf %97, %98 : vector<8x8xf32>
    %cst_54 = arith.constant -1.000000e+09 : f32
    %100 = vector.broadcast %cst_54 : f32 to vector<8x8xf32>
    %101 = arith.select %26, %100, %99 : vector<8x8xi1>, vector<8x8xf32>
    %cst_55 = arith.constant dense<0xFF800000> : vector<8xf32>
    %102 = vector.multi_reduction <maximumf>, %101, %cst_55 [1] : vector<8x8xf32> to vector<8xf32>
    %103 = vector.shape_cast %102 : vector<8xf32> to vector<8x1xf32>
    %104 = vector.broadcast %103 : vector<8x1xf32> to vector<8x8xf32>
    %105 = arith.subf %101, %104 : vector<8x8xf32>
    %106 = math.exp %105 : vector<8x8xf32>
    %cst_56 = arith.constant dense<0.000000e+00> : vector<8xf32>
    %107 = vector.multi_reduction <add>, %106, %cst_56 [1] : vector<8x8xf32> to vector<8xf32>
    %108 = vector.shape_cast %107 : vector<8xf32> to vector<8x1xf32>
    %109 = tpu.reciprocal %108 {approx = true} : vector<8x1xf32> -> vector<8x1xf32>
    %110 = vector.broadcast %109 : vector<8x1xf32> to vector<8x8xf32>
    %111 = arith.mulf %106, %110 : vector<8x8xf32>
    %cst_57 = arith.constant dense<0.000000e+00> : vector<8x8xf32>
    %112 = tpu.matmul %111, %96, %cst_57 {dimension_numbers = #tpu.dot_dimension_numbers<[1], [0], [0], [1], [0, 0, 1, 1], [], []>} : vector<8x8xf32>, vector<8x8xf32>, vector<8x8xf32> -> vector<8x8xf32>
    %c24 = arith.constant 24 : index
    %c0_58 = arith.constant 0 : index
    %113 = vector.load %arg11[%c24, %c0_58] : memref<32x32xf32, #tpu.memory_space<vmem>>, vector<8x32xf32>
    %cst_59 = arith.constant dense<0.000000e+00> : vector<8x32xf32>
    %114 = tpu.matmul %112, %113, %cst_59 {dimension_numbers = #tpu.dot_dimension_numbers<[1], [0], [0], [1], [0, 0, 1, 1], [], []>} : vector<8x8xf32>, vector<8x32xf32>, vector<8x32xf32> -> vector<8x32xf32>
    %115 = arith.addf %93, %114 : vector<8x32xf32>
    %c0_60 = arith.constant 0 : index
    %c0_61 = arith.constant 0 : index
    %116 = vector.load %arg12[%c0_60, %c0_61] : memref<1x32xf32, #tpu.memory_space<vmem>>, vector<1x32xf32>
    %117 = vector.broadcast %116 : vector<1x32xf32> to vector<8x32xf32>
    %118 = arith.addf %115, %117 : vector<8x32xf32>
    %c0_62 = arith.constant 0 : index
    %c0_63 = arith.constant 0 : index
    %c0_64 = arith.constant 0 : index
    %119 = vector.load %arg13[%c0_62, %c0_63, %c0_64] : memref<1x8x32xf32, #tpu.memory_space<vmem>>, vector<1x8x32xf32>
    %120 = vector.shape_cast %119 : vector<1x8x32xf32> to vector<8x32xf32>
    %121 = vector.shape_cast %118 : vector<8x32xf32> to vector<1x8x32xf32>
    tpu.vector_store %arg13[%c0_62, %c0_63, %c0_64], %121 {strides = array<i32>} : memref<1x8x32xf32, #tpu.memory_space<vmem>>, vector<1x8x32xf32>,
    return
  }
  func.func @transform_0(%arg0: i32) -> (i32, i32, i32) {
    %c0_i32 = arith.constant 0 : i32
    %c0_i32_0 = arith.constant 0 : i32
    %c0_i32_1 = arith.constant 0 : i32
    return %arg0, %c0_i32, %c0_i32_0 : i32, i32, i32
  }
  func.func @transform_1(%arg0: i32) -> (i32, i32, i32) {
    %c0_i32 = arith.constant 0 : i32
    %c0_i32_0 = arith.constant 0 : i32
    %c0_i32_1 = arith.constant 0 : i32
    return %arg0, %c0_i32, %c0_i32_0 : i32, i32, i32
  }
  func.func @transform_2(%arg0: i32) -> (i32, i32, i32) {
    %c0_i32 = arith.constant 0 : i32
    %c0_i32_0 = arith.constant 0 : i32
    %c0_i32_1 = arith.constant 0 : i32
    return %arg0, %c0_i32, %c0_i32_0 : i32, i32, i32
  }
  func.func @transform_3(%arg0: i32) -> (i32, i32, i32) {
    %c0_i32 = arith.constant 0 : i32
    %c0_i32_0 = arith.constant 0 : i32
    %c0_i32_1 = arith.constant 0 : i32
    return %arg0, %c0_i32, %c0_i32_0 : i32, i32, i32
  }
  func.func @transform_4(%arg0: i32) -> (i32, i32) {
    %c0_i32 = arith.constant 0 : i32
    %c0_i32_0 = arith.constant 0 : i32
    %c0_i32_1 = arith.constant 0 : i32
    return %c0_i32, %c0_i32_0 : i32, i32
  }
  func.func @transform_5(%arg0: i32) -> (i32, i32) {
    %c0_i32 = arith.constant 0 : i32
    %c0_i32_0 = arith.constant 0 : i32
    %c0_i32_1 = arith.constant 0 : i32
    return %c0_i32, %c0_i32_0 : i32, i32
  }
  func.func @transform_6(%arg0: i32) -> (i32, i32) {
    %c0_i32 = arith.constant 0 : i32
    %c0_i32_0 = arith.constant 0 : i32
    %c0_i32_1 = arith.constant 0 : i32
    return %c0_i32, %c0_i32_0 : i32, i32
  }
  func.func @transform_7(%arg0: i32) -> (i32, i32) {
    %c0_i32 = arith.constant 0 : i32
    %c0_i32_0 = arith.constant 0 : i32
    %c0_i32_1 = arith.constant 0 : i32
    return %c0_i32, %c0_i32_0 : i32, i32
  }
  func.func @transform_8(%arg0: i32) -> (i32, i32) {
    %c0_i32 = arith.constant 0 : i32
    %c0_i32_0 = arith.constant 0 : i32
    %c0_i32_1 = arith.constant 0 : i32
    return %c0_i32, %c0_i32_0 : i32, i32
  }
  func.func @transform_9(%arg0: i32) -> (i32, i32) {
    %c0_i32 = arith.constant 0 : i32
    %c0_i32_0 = arith.constant 0 : i32
    %c0_i32_1 = arith.constant 0 : i32
    return %c0_i32, %c0_i32_0 : i32, i32
  }
  func.func @transform_10(%arg0: i32) -> (i32, i32) {
    %c0_i32 = arith.constant 0 : i32
    %c0_i32_0 = arith.constant 0 : i32
    %c0_i32_1 = arith.constant 0 : i32
    return %c0_i32, %c0_i32_0 : i32, i32
  }
  func.func @transform_11(%arg0: i32) -> (i32, i32) {
    %c0_i32 = arith.constant 0 : i32
    %c0_i32_0 = arith.constant 0 : i32
    %c0_i32_1 = arith.constant 0 : i32
    return %c0_i32, %c0_i32_0 : i32, i32
  }
  func.func @transform_12(%arg0: i32) -> (i32, i32, i32) {
    %c0_i32 = arith.constant 0 : i32
    %c0_i32_0 = arith.constant 0 : i32
    %c0_i32_1 = arith.constant 0 : i32
    return %arg0, %c0_i32, %c0_i32_0 : i32, i32, i32
  }
}

</mosaic_0001>

<bundles_post_ra>
// kernel: tpu_custom_call.1
= control target key start
LH: loop header
LB: loop body
LE: loop exit
PB: predicated region body
PF: predicated region fallthrough
CT: control target
= control target key end

     0   :  { %s2072_s0 = inlined_call_operand.hbm [shape: f32[2,8,32], index: 0, kind: input, shape index: {}]   ;;  %s2073_s1 = inlined_call_operand.hbm [shape: f32[2,8,32], index: 1, kind: input, shape index: {}]   ;;  %s2074_s2 = inlined_call_operand.hbm [shape: f32[2,8,32], index: 2, kind: input, shape index: {}]   ;;  %s2075_s3 = inlined_call_operand.vmem [shape: f32[2,1,8], index: 3, kind: input, shape index: {}]   ;;  %s2076_s4 = inlined_call_operand.hbm [shape: f32[32,32], index: 4, kind: input, shape index: {}]   ;;  %s2077_s5 = inlined_call_operand.hbm [shape: f32[32,32], index: 5, kind: input, shape index: {}]   ;;  %s2078_s6 = inlined_call_operand.hbm [shape: f32[32,32], index: 6, kind: input, shape index: {}]   ;;  %s2079_s7 = inlined_call_operand.vmem [shape: f32[1,32], index: 7, kind: input, shape index: {}]   ;;  %s2080_s8 = inlined_call_operand.vmem [shape: f32[1,32], index: 8, kind: input, shape index: {}]   ;;  %s2081_s9 = inlined_call_operand.vmem [shape: f32[1,32], index: 9, kind: input, shape index: {}]   ;;  %s2082_s10 = inlined_call_operand.hbm [shape: f32[32,32], index: 10, kind: input, shape index: {}]   ;;  %s2083_s11 = inlined_call_operand.vmem [shape: f32[1,32], index: 11, kind: input, shape index: {}]   ;;  %s2084_s12 = inlined_call_operand.hbm [shape: f32[2,8,32], index: 12, kind: output, shape index: {}]  }
   0x1   :  { %2098 = sst [smem:[#allocation26_spill]] %s2073_s1 }
   0x2   :  { %2099 = sst [smem:[#allocation27_spill]] %s2076_s4 }
   0x3   :  { %2100 = sst [smem:[#allocation28_spill]] %s2077_s5 }
   0x4   :  { %2101 = sst [smem:[#allocation29_spill]] %s2078_s6 }
   0x5   :  { %2102 = sst [smem:[#allocation30_spill]] %s2082_s10 }
   0x6   :  { %2103 = sst [smem:[#allocation31_spill]] %s2083_s11 }
   0x7   :  { %17 = vsyncpa [#allocation3], 0 }
   0x8   :  { %19 = vsyncpa [#allocation3 + $0x1], 0 }
   0x9   :  { %20 = vsyncpa [#allocation6], 0 }
   0xa   :  { %22 = vsyncpa [#allocation6 + $0x1], 0 }
   0xb   :  { %23 = vsyncpa [#allocation9], 0 }
   0xc   :  { %24 = vsyncpa [#allocation12], 0 }
   0xd   :  { %25 = vsyncpa [#allocation4], 0 }
   0xe   :  { %27 = vsyncpa [#allocation4 + $0x1], 0  ;;  %s1765_s21 = smov 0   ;;  %s1767_s22 = smov 0  }
   0xf   :  { %s1769_s23 = smov 0   ;;  %s1771_s24 = smov 0  }
  0x10 LB: > { %2104 = sst [smem:[#allocation20_spill]] %s1677_s21  ;;  %s1789_s28 = sadd.s32 4294967295, %s1689_s24   ;;  %s1689_s24 = sphi %s1771_s24, %s2134_s24   ;;  %s1685_s23 = sphi %s1769_s23, %s2138_s23   ;;  %s1681_s22 = sphi %s1767_s22, %s2137_s22   ;;  %s1677_s21 = sphi %s1765_s21, %s2136_s21  }
  0x11   : > { %2105 = sst [smem:[#allocation21_spill]] %s1689_s24  ;;  %p1234_p0 = scmp.ge.s32.totalorder %s1689_s24, 1 }
  0x12   : > { %s2106_s4 = sld [smem:[#allocation27_spill]]  ;;  %p2097_p1 = scmp.eq.s32.totalorder %s1789_s28, 0 }
  0x13   : > { %p336_p2 = scmp.lt.s32.totalorder %s1689_s24, 3  ;;  %s1691_s30 = smov [#allocation8]  }
  0x14   : > { %s349_s13 = sshll.u32 %s1691_s30, 4  ;;  %s2108_s6 = sld [smem:[#allocation29_spill]]  ;;  %s350_s13 = int_to_ptr.vmem [resolvable:$true] %s349_s13 }
  0x15   : > { %p1794_p3 = pnand %p1234_p0, %p336_p2  ;;  %s1692_s18 = smov [#allocation11]  }
  0x16   : > { %s377_s19 = sshll.u32 %s1692_s18, 4  ;;  %s2085_s20 = smov 128   ;;  %s378_s19 = int_to_ptr.vmem [resolvable:$true] %s377_s19 }
  0x17   : > { %p1302_p4 = pneg %p1794_p3  ;;  %s2087_s25 = smov 8  }
  0x18   : > { %s347_s27 = sshll.u32 %s2106_s4, 4  ;;  %s1233_s26 = sadd.s32 4294967294, %s1689_s24   ;;  %s348_s27 = int_to_ptr.hbm [resolvable:$true] %s347_s27 }
  0x19   : > { %p1806_p6 = pnand %p1302_p4, %p2097_p1  ;;  %s1822_s30 = sadd.s32 1, %s1689_s24  }
  0x1a   : > { %s375_s16 = sshll.u32 %s2108_s6, 4  ;;  %2110 = sst [smem:[#allocation22_spill]] %s1822_s30  ;;  %s376_s16 = int_to_ptr.hbm [resolvable:$true] %s375_s16 }
  0x1b   : > { %1305 = dma.hbm_to_vmem [thread:$0]  (!%p1806_p6), %s348_s27, 512, %s350_s13, [#allocation9], %s2085_s20, %s2085_s20, %s2087_s25  }
  0x1c   : > { %1311 = dma.hbm_to_vmem [thread:$0]  (!%p1806_p6), %s376_s16, 512, %s378_s19, [#allocation12], %s2085_s20, %s2085_s20, %s2087_s25  }
  0x1d   : > { %s37_s14 = ssub.s32 %s1689_s24, %s1822_s30  ;;  %s40_s15 = sadd.s32 1, %s1685_s23 }
  0x1e   : > { %p38_p7 = scmp.eq.s32.totalorder %s37_s14, 0  ;;  %p47_p8 = scmp.ne.s32.totalorder %s1685_s23, %s1681_s22 }
  0x1f   : > { %p48_p9 = scmp.eq.s32.totalorder %s1689_s24, 0  ;;  %p53_p10 = scmp.ne.s32.totalorder %s1681_s22, %s1677_s21 }
  0x20   : > { %s1833_s27 = scalar_select %p38_p7, %s1685_s23, %s40_s15  }
  0x21   : > { %p49_p11 = por %p48_p9, %p47_p8  ;;  %p1837_p12 = por %p2097_p1, %p53_p10 }
  0x22   : > { %2111 = sst [smem:[#allocation23_spill]] %s1833_s27  ;;  %p323_p13 = scmp.eq.s32.totalorder %s1789_s28, 1 }
  0x23   : > { %p329_p0 = scmp.eq.s32.totalorder %s1233_s26, 1  ;;  %p1333_p2 = scmp.lt.s32.totalorder %s1689_s24, 2 }
  0x24   : > { %s2092_s16 = sand.u32 1, %s1685_s23   ;;  %p1844_p4 = por %p323_p13, %p47_p8 }
  0x25   : > { %p1848_p5 = por %p329_p0, %p53_p10  ;;  %s1854_s14 = sshll.u32 %s2092_s16, 3 }
  0x26   : > { %s2113_s18 = scalar_select %p1844_p4, 1, 0 }
  0x27   : > { %s2115_s19 = scalar_select %p1848_p5, 1, 0 }
  0x28   : > { %2114 = sst [smem:[#allocation24_spill]] %s2113_s18  ;;  %s1857_s15 = sshll.u32 %s1689_s24, 3 }
  0x29   : > { %2116 = sst [smem:[#allocation25_spill]] %s2115_s19  ;;  %p1859_p7 = pnand %p1333_p2, %p49_p11 }
  0x2a   : > { %s436_s26 = sand.u32 1, %s1689_s24   ;;  %s2118_s1 = sld [smem:[#allocation26_spill]] }
  0x2b   : > { %s440_s30 = scalar_lea.vmem [#allocation5], %s1854_s14  ;;  %s1869_s16 = scalar_lea.sflag [#allocation6], %s436_s26 }
  0x2c   : > { %s448_s19 = sshll.u32 %s440_s30, 4  ;;  %p1465_p9 = pneg %p1859_p7  ;;  %s449_s19 = int_to_ptr.vmem [resolvable:$true] %s448_s19 }
  0x30   : > { %s444_s6 = scalar_lea.hbm %s2118_s1, %s1857_s15 }
  0x31   : > { %s446_s27 = sshll.u32 %s444_s6, 4  ;;  %s1468_s6 = scalar_lea.hbm %s2118_s1, 16  ;;  %s447_s27 = int_to_ptr.hbm [resolvable:$true] %s446_s27 }
  0x32   : > { %s1461_s21 = sshra.s32 %s447_s27, 4  ;;  %s1462_s21 = int_to_ptr.hbm [resolvable:$true] %s1461_s21 }
  0x33   : > { %s1463_s18 = scalar_lea.hbm %s1462_s21, 8  ;;  %p1469_p13 = scmp.lt.s32.totalorder %s1462_s21, %s2118_s1 }
  0x34   : > { %p1464_p8 = scmp.ne.s32.totalorder %s1462_s21, %s1463_s18  ;;  %p1470_p0 = scmp.lt.s32.totalorder %s1468_s6, %s1463_s18 }
  0x36   : > { %p1466_p10 = pnand %p1465_p9, %p1464_p8  ;;  %p1471_p2 = por %p1470_p0, %p1469_p13 }
  0x38   : > { %p1467_p11 = pneg %p1466_p10 }
  0x3a   : > { %p1472_p1 = pnand %p1471_p2, %p1467_p11 }
  0x3c   : > { %1475 = shalt.err (!%p1472_p1)
}
  0x3d   : > { %1321 = dma.hbm_to_vmem [thread:$0]  (!%p1859_p7), %s447_s27, 128, %s449_s19, %s1869_s16  }
  0x3e   : > { %s2119_s5 = sld [smem:[#allocation28_spill]]  ;;  %s1695_s4 = smov [#allocation10]  }
  0x3f   : > { %s363_s21 = sshll.u32 %s1695_s4, 4  ;;  %s2120_s10 = sld [smem:[#allocation30_spill]]  ;;  %s364_s21 = int_to_ptr.vmem [resolvable:$true] %s363_s21 }
  0x40   : > { %s2121_s30 = smov 8   ;;  %s2122_s1 = smov 128  }
  0x41   : > { %s1696_s27 = smov [#allocation13]   ;;  %s425_s4 = scalar_lea.hbm %s2072_s0, %s1857_s15 }
  0x42   : > { %s400_s19 = sshll.u32 %s1696_s27, 4  ;;  %s421_s18 = scalar_lea.vmem [#allocation2], %s1854_s14  ;;  %s401_s19 = int_to_ptr.vmem [resolvable:$true] %s400_s19 }
  0x43   : > { %s429_s6 = sshll.u32 %s421_s18, 4  ;;  %s430_s6 = int_to_ptr.vmem [resolvable:$true] %s429_s6 }
  0x44   : > { %s361_s24 = sshll.u32 %s2119_s5, 4  ;;  %s427_s5 = sshll.u32 %s425_s4, 4  ;;  %s362_s24 = int_to_ptr.hbm [resolvable:$true] %s361_s24  ;;  %s428_s5 = int_to_ptr.hbm [resolvable:$true] %s427_s5 }
  0x45   : > { %s398_s25 = sshll.u32 %s2120_s10, 4  ;;  %s1551_s10 = sshra.s32 %s428_s5, 4  ;;  %s399_s25 = int_to_ptr.hbm [resolvable:$true] %s398_s25  ;;  %s1552_s10 = int_to_ptr.hbm [resolvable:$true] %s1551_s10 }
  0x46   : > { %1308 = dma.hbm_to_vmem [thread:$0]  (!%p1806_p6), %s362_s24, 512, %s364_s21, [#allocation9], %s2122_s1, %s2122_s1, %s2121_s30  }
  0x47   : > { %1314 = dma.hbm_to_vmem [thread:$0]  (!%p1806_p6), %s399_s25, 512, %s401_s19, [#allocation12], %s2122_s1, %s2122_s1, %s2121_s30  }
  0x48   : > { %s2123_s24 = sand.u32 1, %s1685_s23   ;;  %s1553_s27 = scalar_lea.hbm %s1552_s10, 8 }
  0x49   : > { %s418_s21 = scalar_lea.sflag [#allocation3], %s2123_s24  ;;  %p1554_p1 = scmp.ne.s32.totalorder %s1552_s10, %s1553_s27 }
  0x4a   : > { %s1558_s25 = scalar_lea.hbm %s2072_s0, 16  ;;  %p1559_p6 = scmp.lt.s32.totalorder %s1552_s10, %s2072_s0 }
  0x4b   : > { %p1556_p8 = pnand %p1554_p1, %p1465_p9  ;;  %p1560_p11 = scmp.lt.s32.totalorder %s1558_s25, %s1553_s27 }
  0x4d   : > { %p1557_p10 = pneg %p1556_p8  ;;  %p1561_p13 = por %p1560_p11, %p1559_p6 }
  0x4f   : > { %p1562_p0 = pnand %p1561_p13, %p1557_p10 }
  0x51   : > { %1565 = shalt.err (!%p1562_p0)
}
  0x52   : > { %1318 = dma.hbm_to_vmem [thread:$0]  (!%p1859_p7), %s428_s5, 128, %s430_s6, %s418_s21  }
  0x53   : > { %s463_s4 = scalar_lea.hbm %s2074_s2, %s1857_s15  ;;  %s459_s18 = scalar_lea.vmem [#allocation7], %s1854_s14 }
  0x54   : > { %s467_s24 = sshll.u32 %s459_s18, 4  ;;  %s465_s1 = sshll.u32 %s463_s4, 4  ;;  %s468_s24 = int_to_ptr.vmem [resolvable:$true] %s467_s24  ;;  %s466_s1 = int_to_ptr.hbm [resolvable:$true] %s465_s1 }
  0x55   : > { %s1581_s10 = sshra.s32 %s466_s1, 4  ;;  %s1588_s5 = scalar_lea.hbm %s2074_s2, 16  ;;  %s1582_s10 = int_to_ptr.hbm [resolvable:$true] %s1581_s10 }
  0x56   : > { %s1583_s27 = scalar_lea.hbm %s1582_s10, 8  ;;  %p1589_p10 = scmp.lt.s32.totalorder %s1582_s10, %s2074_s2 }
  0x57   : > { %p1584_p2 = scmp.ne.s32.totalorder %s1582_s10, %s1583_s27  ;;  %p1590_p6 = scmp.lt.s32.totalorder %s1588_s5, %s1583_s27 }
  0x59   : > { %p1586_p1 = pnand %p1584_p2, %p1465_p9  ;;  %p1591_p11 = por %p1590_p6, %p1589_p10 }
  0x5b   : > { %p1587_p8 = pneg %p1586_p1 }
  0x5d   : > { %p1592_p13 = pnand %p1591_p11, %p1587_p8 }
  0x5f   : > { %1595 = shalt.err (!%p1592_p13)
}
  0x60   : > { %1324 = dma.hbm_to_vmem [thread:$0]  (!%p1859_p7), %s466_s1, 128, %s468_s24, %s1869_s16  }
  0x61   : > { %482 = sbr.rel (%p1794_p3) target bundleno = 1429 (0x595), region = 68  ;;  %s1939_s14 = sand.u32 (!%p1794_p3), 1, %s1681_s22  }
  0x62   : > { %s1942_s15 = sshll.u32 (!%p1794_p3), %s1939_s14, 3  ;;  %s485_s30 = scalar_lea.sflag (!%p1794_p3), [#allocation3], %s1939_s14 }
  0x63   : > { %s488_s19 = scalar_lea.vmem (!%p1794_p3), [#allocation2], %s1942_s15 }
  0x66   : > { %1656 = dma.done.wait (%p1837_p12), %s485_s30, 128  }
  0x67   : > { %1658 = vsyncadd (%p1837_p12), %s485_s30, 4294967168  ;;  %s494_s29 = sand.u32 1, %s1789_s28   ;;  %s498_s16 = scalar_lea.vmem [#allocation5], %s1942_s15 }
  0x68   : > { %s495_s20 = scalar_lea.sflag [#allocation6], %s494_s29 }
  0x69   : > { %1660 = dma.done.wait (%p1837_p12), %s495_s20, 256  }
  0x6a   : > { %1662 = vsyncadd (%p1837_p12), %s495_s20, 4294967040  ;;  %s508_s11 = scalar_lea.vmem [#allocation7], %s1942_s15  ;;  %p2124_p3 = scmp.eq.s32.totalorder %s1789_s28, 0 }
  0x6c   : > { %1664 = dma.done.wait (%p2124_p3), [#allocation9], 1024   ;;  %p2125_p7 = pmov %p2124_p3 }
  0x6d   : > { %p2126_p9 = pmov %p2124_p3 }
  0x6e   : > { %1666 = vsyncadd (%p2125_p7), [#allocation9], 4294966272 }
  0x6f   : > { %1668 = dma.done.wait (%p2126_p9), [#allocation12], 1024   ;;  %p2127_p0 = pmov %p2124_p3 }
  0x70   : > { %v623_v0 = vld [vmem:[#allocation10 + $0x18] sm:$0xff]  ;;  %v622_v1 = vld [vmem:[#allocation10 + $0x10] sm:$0xff]  ;;  %v621_v4 = vld [vmem:[#allocation10 + $0x8] sm:$0xff]  ;;  %vm595_vm0 = vcmask 261120   ;;  %vm688_vm1 = vcmask 64512   ;;  %s1697_s24 = smov 112  }
  0x71   : > { %1670 = vsyncadd (%p2127_p0), [#allocation12], 4294966272  ;;  %v590_v2 = vld [vmem:[#allocation8 + $0x18] sm:$0xff]  ;;  %643 = vmatpush.msra.mxu1 %v623_v0  ;;  %v589_v3 = vld [vmem:[#allocation8 + $0x10] sm:$0xff]  ;;  %s1698_s1 = smov 120   ;;  %p583_p12 = scmp.lt.s32.totalorder %s1789_s28, 1 }
  0x72   : > { %611 = vmatpush.msra.mxu0 %v590_v2  ;;  %v588_v5 = vld [vmem:[#allocation8 + $0x8] sm:$0xff]  ;;  %v620_v6 = vld [vmem:[#allocation10] sm:$0xff]  ;;  %v586_v9 = vld [vmem:[%s488_s19] sm:$0xff]  ;;  %s1699_s5 = smov 104   ;;  %s1275_s30 = sshll.u32 %s1789_s28, 3 }
  0x73   : > { %644 = vmatpush.msra.mxu1 %v622_v1  ;;  %v587_v7 = vld [vmem:[#allocation8] sm:$0xff]  ;;  %v1380_v10 = vld [vmem:[%s2080_s8] ss:$0 sm:$0xff]  ;;  %s584_s10 = scalar_select %p583_p12, %s1789_s28, 1  ;;  %v655_v24 = vld [vmem:[#allocation11 + $0x18] sm:$0xff] }
  0x74   : > { %612 = vmatpush.msra.mxu0 %v589_v3  ;;  %v619_v8 = vld [vmem:[%s498_s16] sm:$0xff]  ;;  %v1381_v11 = vld [vmem:[%s2079_s7] ss:$0 sm:$0xff]  ;;  %675 = vmatpush.msra.mxu2 %v655_v24  ;;  %s1068_s20 = scalar_lea.hbm %s2084_s12, %s1275_s30  ;;  %s2128_s13 = sld [smem:[#allocation31_spill]] }
  0x75   : > { %645 = vmatpush.msra.mxu1 %v621_v4  ;;  %s585_s25 = scalar_lea.vmem %s2075_s3, %s584_s10  ;;  %v654_v25 = vld [vmem:[#allocation11 + $0x10] sm:$0xff]  ;;  %v653_v26 = vld [vmem:[#allocation11 + $0x8] sm:$0xff]  ;;  %v652_v27 = vld [vmem:[#allocation11] sm:$0xff]  ;;  %s582_s4 = scalar_lea.vmem [#allocation14], %s1942_s15 }
  0x76   : > { %613 = vmatpush.msra.mxu0 %v588_v5  ;;  %v1988_v19 = vld [vmem:[%s585_s25] ss:$0 sm:$0xff]  ;;  %676 = vmatpush.msra.mxu2 %v654_v25  ;;  %v751_v41 = vld [vmem:[#allocation13] sm:$0xff]  ;;  %v1026_v25 = vld [vmem:[#allocation13 + $0x18] sm:$0xff]  ;;  %s1070_s18 = sshll.u32 %s582_s4, 4  ;;  %s1058_s28 = scalar_lea.sflag [#allocation4], %s1939_s14  ;;  %s1071_s18 = int_to_ptr.vmem [resolvable:$true] %s1070_s18 }
  0x77   : > { %646 = vmatpush.msra.mxu1 %v620_v6  ;;  %vm687_vm2 = vcmp.ne.f32.partialorder %v1988_v19, 0.0  ;;  %v651_v28 = vld [vmem:[%s508_s11] sm:$0xff]  ;;  %s1631_s15 = scalar_lea.hbm %s2084_s12, 16 }
  0x78   : > { %614 = vmatpush.msra.mxu0 %v587_v7  ;;  %1256 = vmatmul.msk.f32.vlgmr.msra.gmra.mxu1 %vm595_vm0, %v619_v8  ;;  %v1383_v38 = vld [vmem:[%s2081_s9] ss:$0 sm:$0xff]  ;;  %v820_v8 = vld [vmem:[#allocation13 + $0x8] sm:$0xff] }
  0x79   : > { %1255 = vmatmul.msk.f32.vlgmr.msra.gmra.mxu0 %vm595_vm0, %v586_v9  ;;  %677 = vmatpush.msra.mxu2 %v653_v26  ;;  %v934_v19 = vld [vmem:[#allocation13 + $0x10] sm:$0xff] }
  0x7b   : > { %678 = vmatpush.msra.mxu2 %v652_v27 }
  0x7c   : > { %1257 = vmatmul.msk.f32.vlgmr.msra.gmra.mxu2 %vm595_vm0, %v651_v28 }
  0x7d   : > { %839 = vmatpush.msrb.mxu2 %v820_v8 }
  0x7f   : > { %953 = vmatpush.msra.mxu2 %v934_v19 }
  0xf5   : > { %v648_v12 = vpop.f32.mrf.mxu1 }
  0xf6   : > { %v616_v13 = vpop.f32.mrf.mxu0  ;;  %v649_v14 = vadd.f32 %v1380_v10, %v648_v12 }
  0xf7   : > { %v617_v15 = vadd.f32 %v1381_v11, %v616_v13 }
  0xf8   : > { %869 = vrot.lane.b32.xlu2 %v649_v14, %s1697_s24  ;;  %754 = vrot.lane.b32.xlu1 %v649_v14, %s1698_s1 }
  0xf9   : > { %1258 = vmatpush.xpose.msk.msra.mxu3 %vm688_vm1, %v649_v14 }
  0xfc   : > { %1259 = vmatmul.msk.f32.vlgmr.msra.gmra.mxu3 %vm688_vm1, %v617_v15 }
  0xff   : > { %v680_v39 = vpop.f32.mrf.mxu2 }
 0x100   : > { %961 = vrot.lane.b32.xlu2 %v649_v14, %s1699_s5  ;;  %752 = vrot.lane.b32.xlu1 %v617_v15, %s1698_s1  ;;  %v2005_v40 = vadd.f32 %v1383_v38, %v680_v39 }
 0x102   : > { %746 = vmatpush.msrb.mxu3 %v2005_v40 }
 0x104   : > { %862 = vmatpush.msra.mxu3 %v751_v41 }
 0x108   : > { %959 = vrot.lane.b32.xlu1 %v617_v15, %s1699_s5 }
 0x152   : > { %v870_v17 = vpop.permute.xlu2 %869 }
 0x15a   : > { %v962_v42 = vpop.permute.xlu2 %961 }
 0x16a   : > { %v755_v16 = vpop.permute.xlu1 %754 }
 0x16b   : > { %1261 = vmatpush.xpose.msk.msrb.mxu0 %vm688_vm1, %v755_v16 }
 0x16f   : > { %1266 = vmatpush.xpose.msk.msra.mxu0 %vm688_vm1, %v870_v17 }
 0x172   : > { %v753_v18 = vpop.permute.xlu1 %752 }
 0x173   : > { %1262 = vmatmul.msk.f32.vlgmr.msrb.gmra.mxu0 %vm688_vm1, %v753_v18 }
 0x17a   : > { %v960_v56 = vpop.permute.xlu1 %959 }
 0x17f   : > { %v712_v20 = vpop.f32.mrf.mxu3 }
 0x180   : > { %v715_v21 = vmul.f32 0.35355338, %v712_v20 }
 0x182   : > { %v716_v22 = vsel %vm687_vm2, -1e+09, %v715_v21 }
 0x183   : > { %v717_v23 = vsel %vm688_vm1, %v716_v22, -inf }
 0x184   : > { %718 = vmax.xlane.f32.xlu0 %v717_v23 }
 0x1f0   : > { %v777_v29 = vpop.f32.mrf.mxu0 }
 0x1f1   : > { %v780_v30 = vmul.f32 0.35355338, %v777_v29 }
 0x1f3   : > { %v781_v31 = vsel %vm687_vm2, -1e+09, %v780_v30 }
 0x1f4   : > { %v782_v32 = vsel %vm688_vm1, %v781_v31, -inf }
 0x1f5   : > { %783 = vmax.xlane.f32.xlu2 %v782_v32 }
 0x1f7   : > { %v719_v33 = vpop.xlane.xlu0 %718 }
 0x1f8   : > { %v720_v34 = vsub.f32 %v716_v22, %v719_v33 }
 0x1fa   : > { %v721_v35 = vmul.f32 1.442695, %v720_v34 }
 0x1fc   : > { %1385 = vpow2.f32 %v721_v35 }
 0x202   : > { %v1386_v36 = vpop.eup %1385 }
 0x203   : > { %v723_v37 = vsel %vm688_vm1, %v1386_v36, 0.0 }
 0x204   : > { %724 = vadd.xlane.f32.xlu0 %v723_v37 }
 0x218   : > { %867 = vrot.lane.b32.xlu0 %v617_v15, %s1697_s24 }
 0x268   : > { %v784_v43 = vpop.xlane.xlu2 %783 }
 0x269   : > { %v785_v44 = vsub.f32 %v781_v31, %v784_v43  ;;  %v1384_v31 = vld [vmem:[%s2128_s13] ss:$0 sm:$0xff] }
 0x26b   : > { %v786_v45 = vmul.f32 1.442695, %v785_v44 }
 0x26d   : > { %1387 = vpow2.f32 %v786_v45 }
 0x273   : > { %v1388_v46 = vpop.eup %1387 }
 0x274   : > { %v788_v47 = vsel %vm688_vm1, %v1388_v46, 0.0 }
 0x275   : > { %789 = vadd.xlane.f32.xlu2 %v788_v47 }
 0x277   : > { %v725_v48 = vpop.xlane.xlu0 %724 }
 0x278   : > { %1389 = vrcp.f32 %v725_v48 }
 0x27e   : > { %v1390_v49 = vpop.eup %1389 }
 0x27f   : > { %v727_v50 = vmul.f32 %v1390_v49, %v1386_v36 }
 0x281   : > { %1260 = vmatmul.msk.f32.vlgmr.msrb.gmra.mxu3 %vm688_vm1, %v727_v50 }
 0x282   : > { %1270 = vmatpush.xpose.msk.msrb.mxu3 %vm688_vm1, %v962_v42 }
 0x28a   : > { %v868_v51 = vpop.permute.xlu0 %867 }
 0x28b   : > { %1267 = vmatmul.msk.f32.vlgmr.msra.gmra.mxu0 %vm688_vm1, %v868_v51 }
 0x2e8   : > { %v790_v63 = vpop.xlane.xlu2 %789 }
 0x304   : > { %v748_v52 = vpop.f32.mrf.mxu3 }
 0x305   : > { %1265 = vmatmul.msk.f32.vlgmr.msra.gmra.mxu3 %vm688_vm1, %v748_v52 }
 0x308   : > { %v892_v53 = vpop.f32.mrf.mxu0 }
 0x309   : > { %v895_v54 = vmul.f32 0.35355338, %v892_v53 }
 0x30b   : > { %v896_v55 = vsel %vm687_vm2, -1e+09, %v895_v54 }
 0x30c   : > { %v897_v57 = vsel %vm688_vm1, %v896_v55, -inf }
 0x30d   : > { %1271 = vmatmul.msk.f32.vlgmr.msrb.gmra.mxu3 %vm688_vm1, %v960_v56  ;;  %898 = vmax.xlane.f32.xlu1 %v897_v57 }
 0x326   : > { %794 = vrot.lane.b32.xlu1 %v2005_v40, %s1698_s1 }
 0x380   : > { %v899_v58 = vpop.xlane.xlu1 %898 }
 0x381   : > { %v900_v59 = vsub.f32 %v896_v55, %v899_v58 }
 0x383   : > { %v901_v60 = vmul.f32 1.442695, %v900_v59 }
 0x385   : > { %1391 = vpow2.f32 %v901_v60 }
 0x386   : > { %1393 = vrcp.f32 %v790_v63 }
 0x388   : > { %v864_v61 = vpop.f32.mrf.mxu3 }
 0x38b   : > { %v1392_v62 = vpop.eup %1391 }
 0x38c   : > { %v903_v0 = vsel %vm688_vm1, %v1392_v62, 0.0  ;;  %v1394_v5 = vpop.eup %1393 }
 0x38d   : > { %904 = vadd.xlane.f32.xlu2 %v903_v0  ;;  %v792_v7 = vmul.f32 %v1394_v5, %v1388_v46 }
 0x390   : > { %v984_v1 = vpop.f32.mrf.mxu3 }
 0x391   : > { %v987_v2 = vmul.f32 0.35355338, %v984_v1 }
 0x393   : > { %v988_v3 = vsel %vm687_vm2, -1e+09, %v987_v2 }
 0x394   : > { %v989_v4 = vsel %vm688_vm1, %v988_v3, -inf }
 0x395   : > { %990 = vmax.xlane.f32.xlu0 %v989_v4 }
 0x398   : > { %v795_v6 = vpop.permute.xlu1 %794 }
 0x399   : > { %815 = vmatpush.msrb.mxu1 %v795_v6 }
 0x39a   : > { %1263 = vmatmul.msk.f32.vlgmr.msrb.gmra.mxu1 %vm688_vm1, %v792_v7 }
 0x3a9   : > { %908 = vrot.lane.b32.xlu0 %v2005_v40, %s1697_s24  ;;  %s1072_s24 = sshll.u32 %s1068_s20, 4  ;;  %s1073_s24 = int_to_ptr.hbm [resolvable:$true] %s1072_s24 }
 0x3aa   : > { %s1625_s1 = sshra.s32 %s1073_s24, 4  ;;  %s1626_s1 = int_to_ptr.hbm [resolvable:$true] %s1625_s1 }
 0x3ab   : > { %s1627_s10 = scalar_lea.hbm %s1626_s1, 8  ;;  %p1632_p10 = scmp.lt.s32.totalorder %s1626_s1, %s2084_s12 }
 0x3ac   : > { %p1628_p2 = scmp.ne.s32.totalorder %s1626_s1, %s1627_s10  ;;  %p1633_p6 = scmp.lt.s32.totalorder %s1631_s15, %s1627_s10 }
 0x3ae   : > { %p1629_p1 = pnand %p1628_p2, %p1844_p4  ;;  %p1634_p11 = por %p1633_p6, %p1632_p10 }
 0x3b0   : > { %p1630_p8 = pneg %p1629_p1 }
 0x3b2   : > { %p1635_p13 = pnand %p1634_p11, %p1630_p8 }
 0x400   : > { %v905_v12 = vpop.xlane.xlu2 %904 }
 0x408   : > { %v991_v9 = vpop.xlane.xlu0 %990 }
 0x409   : > { %v992_v10 = vsub.f32 %v988_v3, %v991_v9 }
 0x40b   : > { %v993_v11 = vmul.f32 1.442695, %v992_v10 }
 0x40d   : > { %1395 = vpow2.f32 %v993_v11 }
 0x40e   : > { %1397 = vrcp.f32 %v905_v12 }
 0x413   : > { %v1396_v13 = vpop.eup %1395 }
 0x414   : > { %v995_v14 = vsel %vm688_vm1, %v1396_v13, 0.0  ;;  %v1398_v16 = vpop.eup %1397 }
 0x415   : > { %996 = vadd.xlane.f32.xlu2 %v995_v14  ;;  %v907_v17 = vmul.f32 %v1398_v16, %v1392_v62 }
 0x417   : > { %v817_v15 = vpop.f32.mrf.mxu1 }
 0x418   : > { %1264 = vmatmul.msk.f32.vlgmr.msrb.gmra.mxu2 %vm688_vm1, %v817_v15 }
 0x41b   : > { %v909_v18 = vpop.permute.xlu0 %908 }
 0x41c   : > { %929 = vmatpush.msra.mxu1 %v909_v18 }
 0x41d   : > { %1268 = vmatmul.msk.f32.vlgmr.msra.gmra.mxu1 %vm688_vm1, %v907_v17 }
 0x41e   : > { %1045 = vmatpush.msrb.mxu1 %v1026_v25 }
 0x42d   : > { %1000 = vrot.lane.b32.xlu2 %v2005_v40, %s1699_s5 }
 0x488   : > { %v997_v20 = vpop.xlane.xlu2 %996 }
 0x489   : > { %1399 = vrcp.f32 %v997_v20 }
 0x48f   : > { %v1400_v21 = vpop.eup %1399 }
 0x490   : > { %v999_v22 = vmul.f32 %v1400_v21, %v1396_v13  ;;  %v1001_v23 = vpop.permute.xlu2 %1000 }
 0x491   : > { %1021 = vmatpush.msrb.mxu0 %v1001_v23 }
 0x492   : > { %1272 = vmatmul.msk.f32.vlgmr.msrb.gmra.mxu0 %vm688_vm1, %v999_v22 }
 0x49a   : > { %v931_v24 = vpop.f32.mrf.mxu1 }
 0x49b   : > { %1269 = vmatmul.msk.f32.vlgmr.msra.gmra.mxu2 %vm688_vm1, %v931_v24  ;;  %v841_v27 = vpop.f32.mrf.mxu2 }
 0x49c   : > { %v865_v29 = vadd.f32 %v864_v61, %v841_v27 }
 0x50f   : > { %v1023_v26 = vpop.f32.mrf.mxu0 }
 0x510   : > { %1273 = vmatmul.msk.f32.vlgmr.msrb.gmra.mxu1 %vm688_vm1, %v1023_v26 }
 0x51e   : > { %v955_v28 = vpop.f32.mrf.mxu2 }
 0x51f   : > { %v958_v30 = vadd.f32 %v955_v28, %v865_v29 }
 0x58d   : > { %v1047_v32 = vpop.f32.mrf.mxu1 }
 0x58e   : > { %v1050_v33 = vadd.f32 %v1047_v32, %v958_v30 }
 0x590   : > { %v1055_v34 = vadd.f32 %v1384_v31, %v1050_v33 }
 0x592   : > { %1056 = vst.msk [vmem:[%s582_s4] sm:$0xff] %vm595_vm0, %v1055_v34 }
 0x593   : > { %1638 = shalt.err (!%p1635_p13)
}
 0x594   : > { %1300 = dma.vmem_to_hbm [thread:$0]  (%p1844_p4), %s1071_s18, 128, %s1073_s24, %s1058_s28  }
 0x595 PF: > { %s2130_s14 = sld [smem:[#allocation20_spill]] }
 0x596   : > { %s2132_s21 = sld [smem:[#allocation21_spill]] }
 0x59b   : > { %s1084_s30 = sand.u32 1, %s2130_s14  }
 0x59c   : > { %p2133_p3 = scmp.ge.s32.totalorder %s2132_s21, 2  ;;  %s1085_s19 = scalar_lea.sflag [#allocation4], %s1084_s30 }
 0x59e   : > { %p1326_p7 = pnand %p2133_p3, %p1848_p5 }
 0x5a0   : > { %p1327_p9 = pneg %p1326_p7 }
 0x5a2   : > { %1672 = dma.done.wait (%p1327_p9), %s1085_s19, 128  }
 0x5a3   : > { %1674 = vsyncadd (%p1327_p9), %s1085_s19, 4294967168  ;;  %s2134_s24 = sld [smem:[#allocation22_spill]]  ;;  %s2136_s21 = smov %s1681_s22 }
 0x5a4   : > { %s2135_s29 = sld [smem:[#allocation23_spill]]  ;;  %s2137_s22 = smov %s1685_s23 }
 0x5a9   : > { %p30_p0 = scmp.ge.s32.totalorder %s2134_s24, 4  }
 0x5aa   : > { %s2138_s23 = smov %s2135_s29 }
 0x5ab   :  { %32 = sbr.rel (!%p30_p0) target bundleno = 16 (0x10), region = 156 }
 0x5b0   :  { %1091 = vsyncpa [#allocation3], 1 }
 0x5b1   :  { %1093 = vsyncpa [#allocation3 + $0x1], 1 }
 0x5b2   :  { %1094 = vsyncpa [#allocation6], 1 }
 0x5b3   :  { %1096 = vsyncpa [#allocation6 + $0x1], 1 }
 0x5b4   :  { %1097 = vsyncpa [#allocation9], 1 }
 0x5b5   :  { %1098 = vsyncpa [#allocation12], 1 }
 0x5b6   :  { %1099 = vsyncpa [#allocation4], 1 }
 0x5b7   :  { %1101 = vsyncpa [#allocation4 + $0x1], 1 }

</bundles_post_ra>
